<compile_context>
chip_gen: v5e
topology: v5e:2x2
jax: 0.10.0
libtpu: 0.0.40
codegen_flags: <defaults>
</compile_context>

<pallas_src>
import functools

import jax
import jax.numpy as jnp
from jax.experimental import pallas as pl
from jax.experimental.pallas import tpu as pltpu


def _round_up(x: int, m: int) -> int:
    return (x + m - 1) // m * m


def crossnet_kernel(x_ref, w_ref, b_ref, o_ref, *, layer_num, chunk_rows, use_mxu):
    """All cross layers fused; one batch tile per grid step.

    x_ref : (TB, W)            VMEM — x0 tile (I/O dtype, upcast to f32 in-register)
    w_ref : (L, W) / (L, W, W) VMEM — weights (constant index_map -> resident)
    b_ref : (L,)               SMEM — per-layer scalar biases
    o_ref : (TB, W)            VMEM — output tile (final x1)
    """
    tb = x_ref.shape[0]

    # Per-layer constants, hoisted out of the chunk loop (tiny; vreg/sreg resident).
    bias = [b_ref[l] for l in range(layer_num)]
    if not use_mxu:
        w_row = [w_ref[l : l + 1, :].astype(jnp.float32) for l in range(layer_num)]

    def process_chunk(r0, rows):
        sl = pl.ds(r0, rows)
        x0c = x_ref[sl, :].astype(jnp.float32)      # single VMEM read per chunk
        x1c = x0c                                   # layer 0: x1 == x0 (no scratch)
        for l in range(layer_num):                  # static unroll; DCN layer_num is small
            if use_mxu:
                # Weights column-replicated to (W, W): the matmul computes the row
                # dot AND broadcasts it across lanes in one MXU op (standard TPU
                # matmul precision), keeping the XLU/VALU free.
                s = jnp.dot(x1c, w_ref[l].astype(jnp.float32),
                            preferred_element_type=jnp.float32)        # (rows, W)
            else:
                s = jnp.sum(x1c * w_row[l], axis=1, keepdims=True)     # (rows, 1)
            x1c = x0c * s + bias[l] + x1c
        o_ref[sl, :] = x1c.astype(o_ref.dtype)      # single VMEM write per chunk

    n_full = tb // chunk_rows
    rem = tb - n_full * chunk_rows
    if 0 < n_full <= 8:
        for c in range(n_full):                     # short static unroll
            process_chunk(c * chunk_rows, chunk_rows)
    elif n_full > 8:
        def body(c, carry):                         # visible loop bounds live ranges
            process_chunk(pl.multiple_of(c * chunk_rows, 8), chunk_rows)
            return carry
        jax.lax.fori_loop(0, n_full, body, 0)
    if rem > 0:                                     # ragged tail inside the block
        process_chunk(n_full * chunk_rows, rem)


def _default_use_mxu_reduce(width: int) -> bool:
    # MXU reduce+broadcast pays off in the compute-bound regime (v7x: high HBM BW);
    # keep the XLU path on v5e/v6e where the kernel stays HBM-bound. Gate on width so
    # the replicated (L, W, W) weight slab stays small.
    if width > 256:
        return False
    try:
        kind = jax.devices()[0].device_kind.lower()
    except Exception:
        return False
    return "v7" in kind


def crossnet_forward(x0, weights, biases, *, block_batch=None, use_mxu_reduce=None):
    """x0: (B, W); weights: (L, W); biases: (L,) or (L, 1). Returns (B, W) in x0.dtype."""
    B, W = x0.shape
    L = weights.shape[0]

    if use_mxu_reduce is None:
        use_mxu_reduce = _default_use_mxu_reduce(W)

    W_lanes = max(128, _round_up(W, 128))        # physical lane footprint of one row
    itemsize = jnp.dtype(x0.dtype).itemsize

    # Register-resident row chunk: x0 + x1 (+ broadcast s on the MXU path) should stay
    # within ~40 f32 vregs so the per-layer update never round-trips VMEM.
    n_live = 3 if use_mxu_reduce else 2
    chunk = (40 * 8 * 128) // (n_live * W_lanes)
    chunk = max(8, min(256, chunk - chunk % 8))

    # Batch tile: target ~512 rows, keep >= 4 grid steps when the batch allows it
    # (2 per TensorCore under megacore), and keep double-buffered in+out tiles
    # under ~24 MiB of VMEM.
    if block_batch is not None:
        TB = max(1, min(int(block_batch), B))
    elif B <= chunk:
        TB = B
    else:
        vmem_cap_rows = (24 << 20) // max(1, 4 * W_lanes * itemsize)
        TB = min(512, _round_up(pl.cdiv(B, 4), 8), max(8, vmem_cap_rows))

    if TB >= B:
        TB = B                                   # single block == full dim (always legal)
        chunk = min(chunk, TB)
    else:
        TB = max(8, TB - TB % 8)                 # block sublane dim must be 8-aligned
        chunk = min(chunk, TB)
        TB = max(chunk, (TB // chunk) * chunk)   # whole chunks per block
    grid_b = pl.cdiv(B, TB)                      # ragged last block: masked edge writeback

    w_f32 = weights.astype(jnp.float32)
    b_flat = jnp.reshape(biases, (L,)).astype(jnp.float32)

    if use_mxu_reduce:
        # Column-replicated weights: dot(x1, w_rep[l]) == row-dot broadcast over lanes.
        w_arg = jnp.broadcast_to(w_f32[:, :, None], (L, W, W))
        w_spec = pl.BlockSpec((L, W, W), lambda i: (0, 0, 0))   # constant -> VMEM resident
        w_vmem = L * _round_up(W, 8) * W_lanes * 4
    else:
        w_arg = w_f32
        w_spec = pl.BlockSpec((L, W), lambda i: (0, 0))         # constant -> VMEM resident
        w_vmem = _round_up(L, 8) * W_lanes * 4

    # VMEM budget: double-buffered input + output tiles, resident weights, slack.
    vmem_needed = 4 * TB * W_lanes * itemsize + 2 * w_vmem + (2 << 20)
    vmem_limit = int(min(max(vmem_needed, 16 << 20), 56 << 20))

    kernel = functools.partial(
        crossnet_kernel, layer_num=L, chunk_rows=chunk, use_mxu=use_mxu_reduce)

    return pl.pallas_call(
        kernel,
        out_shape=jax.ShapeDtypeStruct((B, W), x0.dtype),
        grid=(grid_b,),
        in_specs=[
            pl.BlockSpec((TB, W), lambda i: (i, 0)),             # x0: batch-tiled, pipelined
            w_spec,                                              # weights: VMEM resident
            pl.BlockSpec(memory_space=pltpu.MemorySpace.SMEM),   # biases: SMEM scalars
        ],
        out_specs=pl.BlockSpec((TB, W), lambda i: (i, 0)),
        compiler_params=pltpu.CompilerParams(
            dimension_semantics=("parallel",),   # independent batch tiles -> megacore
            vmem_limit_bytes=vmem_limit,
        ),
    )(x0, w_arg, b_flat)


def init_crossnet_params(key, width, layer_num):
    """Matches the PyTorch module init:
    - bias: zeros(1,) per layer
    - w: xavier_uniform on shape (1, width) => bound = sqrt(6 / (1 + width))
    """
    bound = float(jnp.sqrt(6.0 / (1.0 + width)))
    keys = jax.random.split(key, layer_num)
    ws = jnp.stack(
        [jax.random.uniform(k, (width,), jnp.float32, -bound, bound) for k in keys],
        axis=0,
    )  # (L, W)
    bs = jnp.zeros((layer_num, 1), jnp.float32)  # (L, 1)
    return ws, bs


def crossnet_reference(x0, weights, biases):
    """Pure-JAX reference of the PyTorch forward pass."""
    x1 = x0
    for l in range(weights.shape[0]):
        s = jnp.sum(x1 * weights[l][None, :], axis=1, keepdims=True)
        x1 = x0 * s + biases[l, 0] + x1
    return x1


if __name__ == "__main__":
    batch, width, layer_num = 8, 32, 3    # e.g. 4 feature fields x 8-dim embeddings

    key = jax.random.PRNGKey(0)
    kx, kp = jax.random.split(key)
    x0 = jax.random.normal(kx, (batch, width), jnp.float32)
    weights, biases = init_crossnet_params(kp, width, layer_num)

    ref = crossnet_reference(x0, weights, biases)

    # 1) Exact path: f32 I/O, XLU lane reduction.
    out = jax.block_until_ready(
        crossnet_forward(x0, weights, biases, use_mxu_reduce=False))
    assert out.shape == (batch, width)
    assert jnp.allclose(out, ref, atol=1e-5, rtol=1e-5), "XLU path mismatch"

    # 2) MXU fused reduce+broadcast path (auto-chosen on v7x; forced here so it is
    #    exercised on any TPU). Max-normalized error bound since the MXU runs at
    #    standard TPU matmul precision.
    out_mxu = jax.block_until_ready(
        crossnet_forward(x0, weights, biases, use_mxu_reduce=True))
    err = float(jnp.max(jnp.abs(out_mxu - ref)) / (jnp.max(jnp.abs(ref)) + 1e-12))
    assert err < 5e-2, f"MXU path mismatch: {err}"

    # 3) bf16 activations in HBM (halved I/O traffic), auto path selection.
    x0_bf16 = x0.astype(jnp.bfloat16)
    ref_bf16 = crossnet_reference(x0_bf16.astype(jnp.float32), weights, biases)
    out_bf16 = jax.block_until_ready(crossnet_forward(x0_bf16, weights, biases))
    err = float(jnp.max(jnp.abs(out_bf16.astype(jnp.float32) - ref_bf16))
                / (jnp.max(jnp.abs(ref_bf16)) + 1e-12))
    assert err < 5e-2, f"bf16 I/O mismatch: {err}"

    # 4) Multi-step batch grid with a ragged last block (masked edge writeback).
    x_big = jax.random.normal(jax.random.PRNGKey(1), (40, width), jnp.float32)
    ref_big = crossnet_reference(x_big, weights, biases)
    out_big = jax.block_until_ready(
        crossnet_forward(x_big, weights, biases, block_batch=16, use_mxu_reduce=False))
    assert jnp.allclose(out_big, ref_big, atol=1e-5, rtol=1e-5), "ragged-grid mismatch"

    print("KERNEL_OK")
</pallas_src>

<mosaic_0001>
module attributes {stable_mosaic.version = 11 : i64} {
  func.func @crossnet_kernel(%arg0: i32, %arg1: memref<8x32xf32, #tpu.memory_space<vmem>>, %arg2: memref<3x32xf32, #tpu.memory_space<vmem>>, %arg3: memref<3xf32, #tpu.memory_space<smem>>, %arg4: memref<8x32xf32, #tpu.memory_space<vmem>>) attributes {dimension_semantics = [#tpu.dimension_semantics<parallel>], iteration_bounds = array<i64: 1>, scalar_prefetch = 0 : i64, scratch_operands = 0 : i64, tpu.core_type = #tpu.core_type<tc>, window_params = [{transform_indices = @transform_0, window_bounds = array<i64: 8, 32>}, {pipeline_mode = #tpu.pipeline_mode<synchronous>, transform_indices = @transform_1, window_bounds = array<i64: 3, 32>}, {transform_indices = @transform_2, window_bounds = array<i64: 3>}, {transform_indices = @transform_3, window_bounds = array<i64: 8, 32>}]} {
    %c0 = arith.constant 0 : index
    %0 = memref.load %arg3[%c0] : memref<3xf32, #tpu.memory_space<smem>>
    %c1 = arith.constant 1 : index
    %1 = memref.load %arg3[%c1] : memref<3xf32, #tpu.memory_space<smem>>
    %c2 = arith.constant 2 : index
    %2 = memref.load %arg3[%c2] : memref<3xf32, #tpu.memory_space<smem>>
    %c0_0 = arith.constant 0 : index
    %c0_1 = arith.constant 0 : index
    %3 = vector.load %arg2[%c0_0, %c0_1] : memref<3x32xf32, #tpu.memory_space<vmem>>, vector<1x32xf32>
    %c1_2 = arith.constant 1 : index
    %c0_3 = arith.constant 0 : index
    %4 = vector.load %arg2[%c1_2, %c0_3] : memref<3x32xf32, #tpu.memory_space<vmem>>, vector<1x32xf32>
    %c2_4 = arith.constant 2 : index
    %c0_5 = arith.constant 0 : index
    %5 = vector.load %arg2[%c2_4, %c0_5] : memref<3x32xf32, #tpu.memory_space<vmem>>, vector<1x32xf32>
    %c0_6 = arith.constant 0 : index
    %c0_7 = arith.constant 0 : index
    %6 = vector.load %arg1[%c0_6, %c0_7] : memref<8x32xf32, #tpu.memory_space<vmem>>, vector<8x32xf32>
    %7 = vector.broadcast %3 : vector<1x32xf32> to vector<8x32xf32>
    %8 = arith.mulf %6, %7 : vector<8x32xf32>
    %cst = arith.constant dense<0.000000e+00> : vector<8xf32>
    %9 = vector.multi_reduction <add>, %8, %cst [1] : vector<8x32xf32> to vector<8xf32>
    %10 = vector.shape_cast %9 : vector<8xf32> to vector<8x1xf32>
    %11 = vector.broadcast %10 : vector<8x1xf32> to vector<8x32xf32>
    %12 = arith.mulf %6, %11 : vector<8x32xf32>
    %13 = vector.broadcast %0 : f32 to vector<8x32xf32>
    %14 = arith.addf %12, %13 : vector<8x32xf32>
    %15 = arith.addf %14, %6 : vector<8x32xf32>
    %16 = vector.broadcast %4 : vector<1x32xf32> to vector<8x32xf32>
    %17 = arith.mulf %15, %16 : vector<8x32xf32>
    %cst_8 = arith.constant dense<0.000000e+00> : vector<8xf32>
    %18 = vector.multi_reduction <add>, %17, %cst_8 [1] : vector<8x32xf32> to vector<8xf32>
    %19 = vector.shape_cast %18 : vector<8xf32> to vector<8x1xf32>
    %20 = vector.broadcast %19 : vector<8x1xf32> to vector<8x32xf32>
    %21 = arith.mulf %6, %20 : vector<8x32xf32>
    %22 = vector.broadcast %1 : f32 to vector<8x32xf32>
    %23 = arith.addf %21, %22 : vector<8x32xf32>
    %24 = arith.addf %23, %15 : vector<8x32xf32>
    %25 = vector.broadcast %5 : vector<1x32xf32> to vector<8x32xf32>
    %26 = arith.mulf %24, %25 : vector<8x32xf32>
    %cst_9 = arith.constant dense<0.000000e+00> : vector<8xf32>
    %27 = vector.multi_reduction <add>, %26, %cst_9 [1] : vector<8x32xf32> to vector<8xf32>
    %28 = vector.shape_cast %27 : vector<8xf32> to vector<8x1xf32>
    %29 = vector.broadcast %28 : vector<8x1xf32> to vector<8x32xf32>
    %30 = arith.mulf %6, %29 : vector<8x32xf32>
    %31 = vector.broadcast %2 : f32 to vector<8x32xf32>
    %32 = arith.addf %30, %31 : vector<8x32xf32>
    %33 = arith.addf %32, %24 : vector<8x32xf32>
    %c0_10 = arith.constant 0 : index
    %c0_11 = arith.constant 0 : index
    %34 = vector.load %arg4[%c0_10, %c0_11] : memref<8x32xf32, #tpu.memory_space<vmem>>, vector<8x32xf32>
    tpu.vector_store %arg4[%c0_10, %c0_11], %33 {strides = array<i32>} : memref<8x32xf32, #tpu.memory_space<vmem>>, vector<8x32xf32>,
    return
  }
  func.func @transform_0(%arg0: i32) -> (i32, i32) {
    %c0_i32 = arith.constant 0 : i32
    %c0_i32_0 = arith.constant 0 : i32
    return %arg0, %c0_i32 : i32, i32
  }
  func.func @transform_1(%arg0: i32) -> (i32, i32) {
    %c0_i32 = arith.constant 0 : i32
    %c0_i32_0 = arith.constant 0 : i32
    %c0_i32_1 = arith.constant 0 : i32
    return %c0_i32, %c0_i32_0 : i32, i32
  }
  func.func @transform_2(%arg0: i32) -> i32 {
    %c0_i32 = arith.constant 0 : i32
    %c0_i32_0 = arith.constant 0 : i32
    return %c0_i32 : i32
  }
  func.func @transform_3(%arg0: i32) -> (i32, i32) {
    %c0_i32 = arith.constant 0 : i32
    %c0_i32_0 = arith.constant 0 : i32
    return %arg0, %c0_i32 : i32, i32
  }
}

</mosaic_0001>

<bundles_post_ra>
// kernel: tpu_custom_call.1
= control target key start
LH: loop header
LB: loop body
LE: loop exit
PB: predicated region body
PF: predicated region fallthrough
CT: control target
= control target key end

     0   :  { %8 = vsyncpa [#allocation3], 0  ;;  %s252_s0 = inlined_call_operand.hbm [shape: f32[8,32], index: 0, kind: input, shape index: {}]   ;;  %s253_s1 = inlined_call_operand.hbm [shape: f32[3,32], index: 1, kind: input, shape index: {}]   ;;  %s254_s2 = inlined_call_operand.vmem [shape: f32[3], index: 2, kind: input, shape index: {}]   ;;  %s255_s3 = inlined_call_operand.hbm [shape: f32[8,32], index: 3, kind: output, shape index: {}]  }
   0x1   :  { %9 = vsyncpa [#allocation7], 0 }
   0x2   :  { %10 = vsyncpa [#allocation5], 0 }
   0x3   :  { %11 = vsyncpa [#allocation4], 0  ;;  %s17_s14 = sshll.u32 %s252_s0, 4  ;;  %s212_s15 = smov [#allocation2]   ;;  %s18_s14 = int_to_ptr.hbm [resolvable:$true] %s17_s14 }
   0x4   :  { %s19_s16 = sshll.u32 %s212_s15, 4  ;;  %s28_s19 = sshll.u32 %s253_s1, 4  ;;  %s20_s16 = int_to_ptr.vmem [resolvable:$true] %s19_s16  ;;  %s29_s19 = int_to_ptr.hbm [resolvable:$true] %s28_s19 }
   0x5   :  { %22 = dma.hbm_to_vmem [thread:$0]  %s18_s14, 128, %s20_s16, [#allocation3]  }
   0x6   :  { %s213_s20 = smov [#allocation6]   ;;  %s39_s24 = sshll.u32 %s254_s2, 4  ;;  %s40_s24 = int_to_ptr.vmem [resolvable:$true] %s39_s24 }
   0x7   :  { %s30_s21 = sshll.u32 %s213_s20, 4  ;;  %s214_s0 = smov [#allocation8]   ;;  %s31_s21 = int_to_ptr.vmem [resolvable:$true] %s30_s21 }
   0x8   :  { %33 = dma.hbm_to_vmem [thread:$0]  %s29_s19, 64, %s31_s21, [#allocation7]  }
   0x9   :  { %42 = dma.vmem_to_smem %s40_s24, 16, %s214_s0, [#allocation5]  }
   0xa   :  { %204 = dma.done.wait [#allocation3], 128  }
   0xb   :  { %205 = vsyncadd [#allocation3], 4294967168 }
   0xc   :  { %206 = dma.done.wait [#allocation7], 64  }
   0xd   :  { %207 = vsyncadd [#allocation7], 4294967232 }
   0xe   :  { %208 = dma.done.wait [#allocation5], 16  }
   0xf   :  { %209 = vsyncadd [#allocation5], 4294967280 }
  0x10   :  { %55 = sfence }
  0x11   :  { %v62_v0 = vld [vmem:[#allocation2] sm:$0xff]  ;;  %v117_v1 = vld [vmem:[#allocation6] ss:$0 sm:$0xff]  ;;  %vm65_vm0 = vcmask 261120   ;;  %s56_s1 = sld [smem:[#allocation8]]  ;;  %s215_s26 = smov [#allocation9]  }
  0x12   :  { %v64_v2 = vmul.f32 %v117_v1, %v62_v0  ;;  %v118_v8 = vld [vmem:[#allocation6 + $0x1] ss:$0 sm:$0xff]  ;;  %s111_s2 = sld [smem:[#allocation8 + $0x1]]  ;;  %v119_v16 = vld [vmem:[#allocation6 + $0x2] ss:$0 sm:$0xff]  ;;  %s97_s27 = sshll.u32 %s215_s26, 4  ;;  %s98_s27 = int_to_ptr.vmem [resolvable:$true] %s97_s27 }
  0x13   :  { %s112_s25 = sld [smem:[#allocation8 + $0x2]]  ;;  %s99_s30 = sshll.u32 %s255_s3, 4  ;;  %s100_s30 = int_to_ptr.hbm [resolvable:$true] %s99_s30 }
  0x14   :  { %v66_v3 = vsel %vm65_vm0, %v64_v2, 0.0 }
  0x15   :  { %67 = vadd.xlane.f32.xlu0 %v66_v3 }
  0x17   :  { %v70_v5 = vstv %s56_s1 }
  0x18   :  { %v79_v12 = vstv %s111_s2 }
  0x19   :  { %v88_v20 = vstv %s112_s25 }
  0x88   :  { %v68_v4 = vpop.xlane.xlu0 %67 }
  0x89   :  { %v69_v6 = vmul.f32 %v68_v4, %v62_v0 }
  0x8b   :  { %v71_v7 = vadd.f32 %v70_v5, %v69_v6 }
  0x8d   :  { %v72_v9 = vadd.f32 %v71_v7, %v62_v0 }
  0x8f   :  { %v74_v10 = vmul.f32 %v118_v8, %v72_v9 }
  0x91   :  { %v75_v11 = vsel %vm65_vm0, %v74_v10, 0.0 }
  0x92   :  { %76 = vadd.xlane.f32.xlu0 %v75_v11 }
 0x105   :  { %v77_v13 = vpop.xlane.xlu0 %76 }
 0x106   :  { %v78_v14 = vmul.f32 %v77_v13, %v62_v0 }
 0x108   :  { %v80_v15 = vadd.f32 %v79_v12, %v78_v14 }
 0x10a   :  { %v81_v17 = vadd.f32 %v80_v15, %v72_v9 }
 0x10c   :  { %v83_v18 = vmul.f32 %v119_v16, %v81_v17 }
 0x10e   :  { %v84_v19 = vsel %vm65_vm0, %v83_v18, 0.0 }
 0x10f   :  { %85 = vadd.xlane.f32.xlu1 %v84_v19 }
 0x182   :  { %v86_v21 = vpop.xlane.xlu1 %85 }
 0x183   :  { %v87_v22 = vmul.f32 %v86_v21, %v62_v0 }
 0x185   :  { %v89_v23 = vadd.f32 %v88_v20, %v87_v22 }
 0x187   :  { %v90_v24 = vadd.f32 %v89_v23, %v81_v17 }
 0x189   :  { %91 = vst.msk [vmem:[#allocation9] sm:$0xff] %vm65_vm0, %v90_v24 }
 0x18a   :  { %102 = dma.vmem_to_hbm [thread:$0]  %s98_s27, 128, %s100_s30, [#allocation4]  }
 0x18b   :  { %210 = dma.done.wait [#allocation4], 128  }
 0x18c   :  { %211 = vsyncadd [#allocation4], 4294967168 }
 0x18d   :  { %107 = vsyncpa [#allocation3], 1 }
 0x18e   :  { %108 = vsyncpa [#allocation7], 1 }
 0x18f   :  { %109 = vsyncpa [#allocation4], 1 }
 0x190   :  { %110 = vsyncpa [#allocation5], 1 }

</bundles_post_ra>
